<compile_context>
chip_gen: v5e
topology: v5e:2x2
jax: 0.10.0
libtpu: 0.0.40
codegen_flags: <defaults>
</compile_context>

<pallas_src>
import functools
import math

import jax
import jax.numpy as jnp
from jax import lax
from jax.experimental import pallas as pl
from jax.experimental.pallas import tpu as pltpu

B, S, A, D = 2, 8, 8, 32  # small shapes consistent with the forward signature


def reference_forward(instruction, state, previous_action, actions, step):
    # Faithful to the PyTorch module: forward body is `pass` -> returns None.
    return None


def _sa_critic_kernel(instr_ref, state_ref, prev_ref, acts_ref, out_ref, *, a):
    """Single gridless invocation over the full batch.

    instr_ref : (B, S, D)   state_ref / prev_ref : (B, D)   acts_ref : (B, A, D)
    out_ref   : (B, 128)    lanes [0:A] = scores, lane A = value, rest zero
    """
    instr = instr_ref[...]                           # (B, S, D)
    state = state_ref[...]                           # (B, D)
    prev = prev_ref[...]                             # (B, D)
    acts = acts_ref[...]                             # (B, A, D)

    d = acts.shape[-1]
    # context query = mean over instruction tokens + state + previous action
    q = jnp.mean(instr, axis=1) + state + prev       # (B, D)

    # scaled dot-product logits over candidate actions: VPU broadcast-multiply
    # + lane reduce (skips MXU push/pop and any XLU transpose of acts)
    scores = jnp.sum(q[:, None, :] * acts, axis=-1) * (1.0 / math.sqrt(d))  # (B, A)

    # numerically-stable softmax over the action axis; reciprocal on the EUP
    m = jnp.max(scores, axis=-1, keepdims=True)
    e = jnp.exp(scores - m)
    denom = jnp.sum(e, axis=-1, keepdims=True)
    w = e * pl.reciprocal(denom, approx=True)        # (B, A)

    # critic value = attention-weighted expectation of the action scores
    value = jnp.sum(w * scores, axis=-1, keepdims=True)   # (B, 1)

    # Build the full lane-dense output in registers (iota/where placement) and
    # write it with a single unmasked store: scores -> lanes [0:a], value ->
    # lane a, remaining lanes deterministically zero.
    b, out_w = out_ref.shape
    sub3 = lax.broadcasted_iota(jnp.int32, (b, a, out_w), 1)   # action index
    lane3 = lax.broadcasted_iota(jnp.int32, (b, a, out_w), 2)  # lane index
    scores_spread = jnp.sum(
        jnp.where(sub3 == lane3, scores[:, :, None], 0.0), axis=1)  # (B, out_w)
    lane2 = lax.broadcasted_iota(jnp.int32, (b, out_w), 1)
    value_spread = jnp.where(lane2 == a, value, 0.0)                # (B, out_w)
    out_ref[...] = (scores_spread + value_spread).astype(out_ref.dtype)


def self_attention_critic(instruction, state, previous_action, actions, step=0):
    """Pallas-backed forward. Returns (q_values [B, A], value [B, 1])."""
    del step  # unused by the reference stub

    b, s, d = instruction.shape
    _, a, _ = actions.shape
    out_w = 128 * pl.cdiv(a + 1, 128)   # lane-dense output width

    vmem = pl.BlockSpec(memory_space=pltpu.MemorySpace.VMEM)
    out = pl.pallas_call(
        functools.partial(_sa_critic_kernel, a=a),
        out_shape=jax.ShapeDtypeStruct((b, out_w), jnp.float32),
        in_specs=[vmem, vmem, vmem, vmem],
        out_specs=vmem,
    )(instruction, state, previous_action, actions)

    return out[:, :a], out[:, a:a + 1]


if __name__ == "__main__":
    key = jax.random.PRNGKey(0)
    k1, k2, k3, k4 = jax.random.split(key, 4)
    instruction = jax.random.normal(k1, (B, S, D), dtype=jnp.float32)
    state = jax.random.normal(k2, (B, D), dtype=jnp.float32)
    previous_action = jax.random.normal(k3, (B, D), dtype=jnp.float32)
    actions = jax.random.normal(k4, (B, A, D), dtype=jnp.float32)
    step = 0

    # faithful reference semantics (stub -> None)
    assert reference_forward(instruction, state, previous_action, actions, step) is None

    q_values, value = self_attention_critic(
        instruction, state, previous_action, actions, step)
    jax.block_until_ready((q_values, value))

    # pure-JAX check of the kernel math
    q_ctx = instruction.mean(axis=1) + state + previous_action            # (B, D)
    ref_scores = jnp.sum(q_ctx[:, None, :] * actions, axis=-1) / math.sqrt(D)
    ref_w = jax.nn.softmax(ref_scores, axis=-1)
    ref_value = jnp.sum(ref_w * ref_scores, axis=-1, keepdims=True)

    assert q_values.shape == (B, A) and value.shape == (B, 1)
    assert jnp.allclose(q_values, ref_scores, rtol=1e-2, atol=1e-2)
    assert jnp.allclose(value, ref_value, rtol=1e-2, atol=1e-2)

    print("KERNEL_OK")
</pallas_src>

<mosaic_0001>
module attributes {stable_mosaic.version = 11 : i64} {
  func.func @_sa_critic_kernel(%arg0: memref<2x8x32xf32, #tpu.memory_space<vmem>>, %arg1: memref<2x32xf32, #tpu.memory_space<vmem>>, %arg2: memref<2x32xf32, #tpu.memory_space<vmem>>, %arg3: memref<2x8x32xf32, #tpu.memory_space<vmem>>, %arg4: memref<2x128xf32, #tpu.memory_space<vmem>>) attributes {dimension_semantics = [], scalar_prefetch = 0 : i64, scratch_operands = 0 : i64, tpu.core_type = #tpu.core_type<tc>} {
    %c0 = arith.constant 0 : index
    %c0_0 = arith.constant 0 : index
    %c0_1 = arith.constant 0 : index
    %0 = vector.load %arg0[%c0, %c0_0, %c0_1] : memref<2x8x32xf32, #tpu.memory_space<vmem>>, vector<2x8x32xf32>
    %c0_2 = arith.constant 0 : index
    %c0_3 = arith.constant 0 : index
    %1 = vector.load %arg1[%c0_2, %c0_3] : memref<2x32xf32, #tpu.memory_space<vmem>>, vector<2x32xf32>
    %c0_4 = arith.constant 0 : index
    %c0_5 = arith.constant 0 : index
    %2 = vector.load %arg2[%c0_4, %c0_5] : memref<2x32xf32, #tpu.memory_space<vmem>>, vector<2x32xf32>
    %c0_6 = arith.constant 0 : index
    %c0_7 = arith.constant 0 : index
    %c0_8 = arith.constant 0 : index
    %3 = vector.load %arg3[%c0_6, %c0_7, %c0_8] : memref<2x8x32xf32, #tpu.memory_space<vmem>>, vector<2x8x32xf32>
    %cst = arith.constant dense<0.000000e+00> : vector<2x32xf32>
    %4 = vector.multi_reduction <add>, %0, %cst [1] : vector<2x8x32xf32> to vector<2x32xf32>
    %cst_9 = arith.constant 8.000000e+00 : f32
    %5 = vector.broadcast %cst_9 : f32 to vector<2x32xf32>
    %6 = arith.divf %4, %5 : vector<2x32xf32>
    %7 = arith.addf %6, %1 : vector<2x32xf32>
    %8 = arith.addf %7, %2 : vector<2x32xf32>
    %9 = vector.shape_cast %8 : vector<2x32xf32> to vector<2x1x32xf32>
    %10 = vector.broadcast %9 : vector<2x1x32xf32> to vector<2x8x32xf32>
    %11 = arith.mulf %10, %3 : vector<2x8x32xf32>
    %cst_10 = arith.constant dense<0.000000e+00> : vector<2x8xf32>
    %12 = vector.multi_reduction <add>, %11, %cst_10 [2] : vector<2x8x32xf32> to vector<2x8xf32>
    %cst_11 = arith.constant 0.176776692 : f32
    %13 = vector.broadcast %cst_11 : f32 to vector<2x8xf32>
    %14 = arith.mulf %12, %13 : vector<2x8xf32>
    %cst_12 = arith.constant dense<0xFF800000> : vector<2xf32>
    %15 = vector.multi_reduction <maximumf>, %14, %cst_12 [1] : vector<2x8xf32> to vector<2xf32>
    %16 = vector.shape_cast %15 : vector<2xf32> to vector<2x1xf32>
    %17 = vector.broadcast %16 : vector<2x1xf32> to vector<2x8xf32>
    %18 = arith.subf %14, %17 : vector<2x8xf32>
    %19 = math.exp %18 : vector<2x8xf32>
    %cst_13 = arith.constant dense<0.000000e+00> : vector<2xf32>
    %20 = vector.multi_reduction <add>, %19, %cst_13 [1] : vector<2x8xf32> to vector<2xf32>
    %21 = vector.shape_cast %20 : vector<2xf32> to vector<2x1xf32>
    %22 = tpu.reciprocal %21 {approx = true} : vector<2x1xf32> -> vector<2x1xf32>
    %23 = vector.broadcast %22 : vector<2x1xf32> to vector<2x8xf32>
    %24 = arith.mulf %19, %23 : vector<2x8xf32>
    %25 = arith.mulf %24, %14 : vector<2x8xf32>
    %cst_14 = arith.constant dense<0.000000e+00> : vector<2xf32>
    %26 = vector.multi_reduction <add>, %25, %cst_14 [1] : vector<2x8xf32> to vector<2xf32>
    %27 = vector.shape_cast %26 : vector<2xf32> to vector<2x1xf32>
    %28 = tpu.iota {dimensions = array<i32: 1>} : vector<2x8x128xi32>
    %29 = tpu.iota {dimensions = array<i32: 2>} : vector<2x8x128xi32>
    %30 = arith.cmpi eq, %28, %29 : vector<2x8x128xi32>
    %31 = vector.shape_cast %14 : vector<2x8xf32> to vector<2x8x1xf32>
    %cst_15 = arith.constant 0.000000e+00 : f32
    %32 = vector.shape_cast %31 : vector<2x8x1xf32> to vector<2x8x1xf32>
    %33 = vector.broadcast %32 : vector<2x8x1xf32> to vector<2x8x128xf32>
    %34 = vector.broadcast %cst_15 : f32 to vector<2x8x128xf32>
    %35 = arith.select %30, %33, %34 : vector<2x8x128xi1>, vector<2x8x128xf32>
    %cst_16 = arith.constant dense<0.000000e+00> : vector<2x128xf32>
    %36 = vector.multi_reduction <add>, %35, %cst_16 [1] : vector<2x8x128xf32> to vector<2x128xf32>
    %37 = tpu.iota {dimensions = array<i32: 1>} : vector<2x128xi32>
    %c8_i32 = arith.constant 8 : i32
    %38 = vector.broadcast %c8_i32 : i32 to vector<2x128xi32>
    %39 = arith.cmpi eq, %37, %38 : vector<2x128xi32>
    %cst_17 = arith.constant 0.000000e+00 : f32
    %40 = vector.shape_cast %27 : vector<2x1xf32> to vector<2x1xf32>
    %41 = vector.broadcast %40 : vector<2x1xf32> to vector<2x128xf32>
    %42 = vector.broadcast %cst_17 : f32 to vector<2x128xf32>
    %43 = arith.select %39, %41, %42 : vector<2x128xi1>, vector<2x128xf32>
    %44 = arith.addf %36, %43 : vector<2x128xf32>
    %c0_18 = arith.constant 0 : index
    %c0_19 = arith.constant 0 : index
    %45 = vector.load %arg4[%c0_18, %c0_19] : memref<2x128xf32, #tpu.memory_space<vmem>>, vector<2x128xf32>
    tpu.vector_store %arg4[%c0_18, %c0_19], %44 {strides = array<i32>} : memref<2x128xf32, #tpu.memory_space<vmem>>, vector<2x128xf32>,
    return
  }
}

</mosaic_0001>

<bundles_post_ra>
// kernel: tpu_custom_call.1
= control target key start
LH: loop header
LB: loop body
LE: loop exit
PB: predicated region body
PF: predicated region fallthrough
CT: control target
= control target key end

     0   :  { %9 = vsyncpa [#allocation3], 0  ;;  %s463_s0 = inlined_call_operand.hbm [shape: f32[2,8,32], index: 0, kind: input, shape index: {}]   ;;  %s464_s1 = inlined_call_operand.hbm [shape: f32[2,32], index: 1, kind: input, shape index: {}]   ;;  %s465_s2 = inlined_call_operand.hbm [shape: f32[2,32], index: 2, kind: input, shape index: {}]   ;;  %s466_s3 = inlined_call_operand.hbm [shape: f32[2,8,32], index: 3, kind: input, shape index: {}]   ;;  %s467_s4 = inlined_call_operand.hbm [shape: f32[2,128], index: 4, kind: output, shape index: {}]  }
   0x1   :  { %10 = vsyncpa [#allocation6], 0 }
   0x2   :  { %11 = vsyncpa [#allocation9], 0  ;;  %s31_s17 = sshll.u32 %s464_s1, 4  ;;  %s32_s17 = int_to_ptr.hbm [resolvable:$true] %s31_s17 }
   0x3   :  { %12 = vsyncpa [#allocation4], 0  ;;  %s393_s18 = smov [#allocation5]   ;;  %s17_s22 = sshll.u32 %s463_s0, 4  ;;  %s18_s22 = int_to_ptr.hbm [resolvable:$true] %s17_s22 }
   0x4   :  { %s33_s19 = sshll.u32 %s393_s18, 4  ;;  %s394_s23 = smov [#allocation2]   ;;  %s34_s19 = int_to_ptr.vmem [resolvable:$true] %s33_s19 }
   0x5   :  { %36 = dma.hbm_to_vmem [thread:$0]  %s32_s17, 32, %s34_s19, [#allocation6]  }
   0x6   :  { %s19_s24 = sshll.u32 %s394_s23, 4  ;;  %s395_s25 = smov 128   ;;  %s20_s24 = int_to_ptr.vmem [resolvable:$true] %s19_s24 }
   0x7   :  { %s396_s26 = smov 8   ;;  %s42_s1 = sshll.u32 %s465_s2, 4  ;;  %s43_s1 = int_to_ptr.hbm [resolvable:$true] %s42_s1 }
   0x8   :  { %25 = dma.hbm_to_vmem [thread:$0]  %s18_s22, 256, %s20_s24, [#allocation3], %s395_s25, %s395_s25, %s396_s26  }
   0x9   :  { %s397_s29 = smov [#allocation7]   ;;  %s52_s0 = sshll.u32 %s466_s3, 4  ;;  %s53_s0 = int_to_ptr.hbm [resolvable:$true] %s52_s0 }
   0xa   :  { %s44_s30 = sshll.u32 %s397_s29, 4  ;;  %s398_s7 = smov [#allocation8]   ;;  %s45_s30 = int_to_ptr.vmem [resolvable:$true] %s44_s30 }
   0xb   :  { %47 = dma.hbm_to_vmem [thread:$0]  %s43_s1, 32, %s45_s30, [#allocation6]  }
   0xc   :  { %s54_s8 = sshll.u32 %s398_s7, 4  ;;  %s55_s8 = int_to_ptr.vmem [resolvable:$true] %s54_s8 }
   0xd   :  { %60 = dma.hbm_to_vmem [thread:$0]  %s53_s0, 256, %s55_s8, [#allocation9], %s395_s25, %s395_s25, %s396_s26  }
   0xe   :  { %385 = dma.done.wait [#allocation3], 256  }
   0xf   :  { %386 = vsyncadd [#allocation3], 4294967040 }
  0x10   :  { %387 = dma.done.wait [#allocation6], 64  }
  0x11   :  { %388 = vsyncadd [#allocation6], 4294967232 }
  0x12   :  { %389 = dma.done.wait [#allocation9], 256  }
  0x13   :  { %390 = vsyncadd [#allocation9], 4294967040  ;;  %v399_v0 = vmov 8.0   ;;  %vm83_vm0 = vcmask 261120   ;;  %v77_v2 = vld [vmem:[#allocation2] sm:$0xff]  ;;  %v78_v3 = vld [vmem:[#allocation2 + $0x8] sm:$0xff]  ;;  %v133_v42 = vlaneseq }
  0x14   :  { %257 = vrcp.f32 %v399_v0  ;;  %v84_v4 = vsel %vm83_vm0, %v77_v2, 0.0  ;;  %v91_v5 = vsel %vm83_vm0, %v78_v3, 0.0  ;;  %v79_v20 = vld [vmem:[#allocation5] sm:$0x3]  ;;  %v80_v25 = vld [vmem:[#allocation7] sm:$0x3] }
  0x15   :  { %v85_v7 = vrot.slane %v84_v4, 4  ;;  %v92_v8 = vrot.slane %v91_v5, 4  ;;  %v108_v23 = vrot.slane %v79_v20, 1  ;;  %v114_v27 = vrot.slane %v80_v25, 1  ;;  %v81_v33 = vld [vmem:[#allocation8] sm:$0xff]  ;;  %v82_v37 = vld [vmem:[#allocation8 + $0x8] sm:$0xff] }
  0x16   :  { %v443_v44 = vand.u32 127, %v133_v42  ;;  %vm137_vm2 = vcmask 1041409   ;;  %vm140_vm3 = vcmask 58368   ;;  %v400_v51 = vmov 0   ;;  %s401_s2 = smov [#allocation10]   ;;  %s233_s11 = sshll.u32 %s467_s4, 4  ;;  %s234_s11 = int_to_ptr.hbm [resolvable:$true] %s233_s11 }
  0x17   :  { %v86_v10 = vadd.f32 %v85_v7, %v84_v4  ;;  %v93_v11 = vadd.f32 %v92_v8, %v91_v5  ;;  %255 = vset.pattern.permute.xlu2 %v400_v51  ;;  %254 = vset.pattern.permute.xlu1 %v400_v51  ;;  %s231_s3 = sshll.u32 %s401_s2, 4  ;;  %s232_s3 = int_to_ptr.vmem [resolvable:$true] %s231_s3 }
  0x18   :  { %256 = vset.pattern.permute.xlu0 %v400_v51  ;;  %vm212_vm5 = vcmp.eq.s32.totalorder %v443_v44, 8 }
  0x19   :  { %v87_v13 = vrot.slane %v86_v10, 2  ;;  %v94_v14 = vrot.slane %v93_v11, 2 }
  0x1a   :  { %v258_v1 = vpop.eup %257 }
  0x1b   :  { %v99_v6 = vmul.f32 8.0, %v258_v1  ;;  %v88_v16 = vadd.f32 %v87_v13, %v86_v10  ;;  %v95_v17 = vadd.f32 %v94_v14, %v93_v11  ;;  %vm103_vm1 = vweird.f32 %v258_v1 }
  0x1d   :  { %v100_v9 = vsub.f32 1.0, %v99_v6  ;;  %v89_v18 = vrot.slane %v88_v16, 1  ;;  %v96_v19 = vrot.slane %v95_v17, 1 }
  0x1f   :  { %v101_v12 = vmul.f32 %v258_v1, %v100_v9  ;;  %v90_v22 = vadd.f32 %v89_v18, %v88_v16  ;;  %v97_v24 = vadd.f32 %v96_v19, %v95_v17  ;;  %v196_v17 = vshrl.u32 %v133_v42, 7 }
  0x21   :  { %v102_v15 = vadd.f32 %v258_v1, %v101_v12  ;;  %vm197_vm4 = vcmp.eq.s32.totalorder %v196_v17, %v443_v44 }
  0x23   :  { %v104_v21 = vsel %vm103_vm1, %v258_v1, %v102_v15 }
  0x24   :  { %v105_v26 = vmul.f32 %v104_v21, %v90_v22  ;;  %v106_v28 = vmul.f32 %v104_v21, %v97_v24 }
  0x26   :  { %v111_v29 = vadd.f32 %v105_v26, %v79_v20  ;;  %v112_v30 = vadd.f32 %v108_v23, %v106_v28 }
  0x28   :  { %v117_v31 = vadd.f32 %v111_v29, %v80_v25  ;;  %v118_v32 = vadd.f32 %v114_v27, %v112_v30 }
  0x2a   :  { %v119_v34 = vperm.slane %v117_v31, 0  ;;  %v120_v36 = vperm.slane %v118_v32, 0 }
  0x2c   :  { %v121_v35 = vmul.f32 %v119_v34, %v81_v33  ;;  %v122_v39 = vmul.f32 %v120_v36, %v82_v37 }
  0x2e   :  { %v123_v38 = vsel %vm83_vm0, %v121_v35, 0.0  ;;  %v126_v40 = vsel %vm83_vm0, %v122_v39, 0.0 }
  0x2f   :  { %124 = vadd.xlane.f32.xlu0 %v123_v38 }
  0x37   :  { %127 = vadd.xlane.f32.xlu0 %v126_v40 }
  0xa2   :  { %v125_v41 = vpop.xlane.xlu0 %124 }
  0xa3   :  { %v129_v43 = vmul.f32 0.17677669, %v125_v41 }
  0xa5   :  { %v135_v47 = vperm.slane %v129_v43, %v443_v44  ;;  %v198_v19 = vsel %vm197_vm4, %v129_v43, 0.0 }
  0xa6   :  { %v200_v21 = vrot.slane %v198_v19, 4 }
  0xa8   :  { %v201_v23 = vadd.f32 %v200_v21, %v198_v19 }
  0xaa   :  { %v128_v45 = vpop.xlane.xlu0 %127  ;;  %v202_v25 = vrot.slane %v201_v23, 2 }
  0xab   :  { %v130_v46 = vmul.f32 0.17677669, %v128_v45 }
  0xac   :  { %v203_v27 = vadd.f32 %v202_v25, %v201_v23 }
  0xad   :  { %v136_v48 = vperm.slane %v130_v46, %v443_v44  ;;  %v199_v18 = vsel %vm197_vm4, %v130_v46, 0.0 }
  0xae   :  { %v206_v20 = vrot.slane %v199_v18, 4  ;;  %v204_v29 = vrot.slane %v203_v27, 1 }
  0xaf   :  { %v138_v49 = vsel %vm137_vm2, %v136_v48, %v135_v47 }
  0xb0   :  { %v141_v50 = vsel %vm140_vm3, %v138_v49, -inf  ;;  %v207_v22 = vadd.f32 %v206_v20, %v199_v18  ;;  %v205_v34 = vadd.f32 %v204_v29, %v203_v27 }
  0xb1   :  { %142 = vmax.xlane.f32.xlu1 %v141_v50 }
  0xb2   :  { %v208_v24 = vrot.slane %v207_v22, 2 }
  0xb4   :  { %v209_v26 = vadd.f32 %v208_v24, %v207_v22 }
  0xb6   :  { %v210_v28 = vrot.slane %v209_v26, 1 }
  0xb8   :  { %v211_v32 = vadd.f32 %v210_v28, %v209_v26 }
 0x124   :  { %v143_v52 = vpop.xlane.xlu1 %142 }
 0x125   :  { %v145_v53 = vperm.slane %v143_v52, 0  ;;  %v146_v54 = vperm.slane %v143_v52, 1 }
 0x127   :  { %v149_v55 = vsub.f32 %v129_v43, %v145_v53  ;;  %v150_v56 = vsub.f32 %v130_v46, %v146_v54 }
 0x129   :  { %v151_v57 = vmul.f32 1.442695, %v149_v55  ;;  %v153_v58 = vmul.f32 1.442695, %v150_v56 }
 0x12b   :  { %259 = vpow2.f32 %v151_v57 }
 0x12c   :  { %261 = vpow2.f32 %v153_v58 }
 0x131   :  { %v260_v59 = vpop.eup %259 }
 0x132   :  { %v262_v60 = vpop.eup %261  ;;  %158 = vperm.xlu1 %254, %v260_v59  }
 0x133   :  { %161 = vperm.xlu2 %255, %v262_v60  }
 0x18d   :  { %v162_v61 = vpop.permute.xlu2 %161 }
 0x18e   :  { %v164_v63 = vperm.slane %v162_v61, %v443_v44 }
 0x1a4   :  { %v159_v62 = vpop.permute.xlu1 %158 }
 0x1a5   :  { %v163_v0 = vperm.slane %v159_v62, %v443_v44 }
 0x1a7   :  { %v165_v1 = vsel %vm137_vm2, %v164_v63, %v163_v0 }
 0x1a8   :  { %v167_v2 = vsel %vm140_vm3, %v165_v1, 0.0 }
 0x1a9   :  { %168 = vadd.xlane.f32.xlu2 %v167_v2 }
 0x21c   :  { %v169_v3 = vpop.xlane.xlu2 %168 }
 0x21d   :  { %263 = vrcp.f32 %v169_v3 }
 0x223   :  { %v264_v4 = vpop.eup %263 }
 0x224   :  { %v172_v5 = vperm.slane %v264_v4, 0  ;;  %v173_v6 = vperm.slane %v264_v4, 1 }
 0x226   :  { %v177_v7 = vmul.f32 %v262_v60, %v173_v6  ;;  %v176_v8 = vmul.f32 %v260_v59, %v172_v5 }
 0x228   :  { %v179_v9 = vmul.f32 %v177_v7, %v130_v46  ;;  %v178_v10 = vmul.f32 %v176_v8, %v129_v43 }
 0x22a   :  { %186 = vperm.xlu1 %254, %v179_v9   ;;  %183 = vperm.xlu0 %256, %v178_v10  }
 0x29c   :  { %v187_v11 = vpop.permute.xlu1 %186  ;;  %v184_v12 = vpop.permute.xlu0 %183 }
 0x29d   :  { %v189_v13 = vperm.slane %v187_v11, %v443_v44  ;;  %v188_v14 = vperm.slane %v184_v12, %v443_v44 }
 0x29f   :  { %v190_v15 = vsel %vm137_vm2, %v189_v13, %v188_v14 }
 0x2a0   :  { %v192_v16 = vsel %vm140_vm3, %v190_v15, 0.0 }
 0x2a1   :  { %193 = vadd.xlane.f32.xlu1 %v192_v16 }
 0x314   :  { %v194_v30 = vpop.xlane.xlu1 %193 }
 0x315   :  { %v213_v31 = vsel %vm212_vm5, %v194_v30, 0.0 }
 0x316   :  { %v215_v33 = vrot.slane %v213_v31, 1  ;;  %v218_v36 = vadd.f32 %v213_v31, %v205_v34 }
 0x318   :  { %v219_v35 = vadd.f32 %v215_v33, %v211_v32 }
 0x31a   :  { %v222_v37 = vrot.slane %v219_v35, 7 }
 0x31c   :  { %v223_v38 = vsel %vm137_vm2, %v222_v37, %v218_v36 }
 0x31d   :  { %225 = vst [vmem:[#allocation10] sm:$0x3] %v223_v38 }
 0x31e   :  { %236 = dma.vmem_to_hbm [thread:$0]  %s232_s3, 32, %s234_s11, [#allocation4]  }
 0x31f   :  { %391 = dma.done.wait [#allocation4], 32  }
 0x320   :  { %392 = vsyncadd [#allocation4], 4294967264 }
 0x321   :  { %241 = vsyncpa [#allocation3], 1 }
 0x322   :  { %242 = vsyncpa [#allocation6], 1 }
 0x323   :  { %243 = vsyncpa [#allocation9], 1 }
 0x324   :  { %244 = vsyncpa [#allocation4], 1 }

</bundles_post_ra>
